<compile_context>
chip_gen: v5e
topology: v5e:2x2
jax: 0.10.0
libtpu: 0.0.40
codegen_flags: <defaults>
</compile_context>

<pallas_src>
from functools import partial

import jax
import jax.numpy as jnp
from jax import lax
from jax.experimental import pallas as pl
from jax.experimental.pallas import tpu as pltpu


# ------------------------------ helpers ------------------------------------


def _round_up(x, n):
    return ((x + n - 1) // n) * n


def _pad2d(x, rows, cols):
    pr = rows - x.shape[0]
    pc = cols - x.shape[1]
    if pr or pc:
        x = jnp.pad(x, ((0, pr), (0, pc)))
    return x


def _tpu_vmem_bytes():
    """Physical VMEM capacity; conservative 64 MiB (v7x) if unknown."""
    try:
        info = pltpu.get_tpu_info()
        cap = getattr(info, "vmem_capacity_bytes", None)
        if cap:
            return int(cap)
    except Exception:
        pass
    return 64 * 2**20


def _num_tensorcores():
    """2 on v7x (megacore row split pays off), 1 otherwise/unknown."""
    try:
        kind = jax.devices()[0].device_kind.lower()
        if "v7" in kind:
            return 2
    except Exception:
        pass
    return 1


def _k_budget_bytes(vmem_cap):
    # 128 MiB parts (v5e/v6e): use most of VMEM for the streamed k tiles;
    # 64 MiB v7x: stay conservative.
    return 96 * 2**20 if vmem_cap >= 96 * 2**20 else 20 * 2**20


def _pick_k_tile(k, stream_rows, esize, fixed_bytes, vmem_cap):
    """Largest k tile (multiple of 128, <= 2048) whose double-buffered feature
    stream plus the resident accumulator/target buffers fit the VMEM budget."""
    budget = _k_budget_bytes(vmem_cap)
    kp128 = max(128, _round_up(k, 128))
    for tk in (2048, 1024, 512, 256, 128):
        if tk > kp128:
            continue
        if fixed_bytes + 2 * esize * tk * stream_rows <= budget:
            return tk
    return 128


def _pick_row_tile(mp, num_cores):
    """Split the Gram rows in two only when both TensorCores (v7x) can use the
    'parallel' axis, m is large enough to be compute-bound, and each half
    stays lane-aligned.  Single-TC chips keep one block so the feature stream
    is read once."""
    if num_cores >= 2 and mp >= 512 and (mp // 2) % 128 == 0:
        return mp // 2
    return mp


def _vmem_limit(est_bytes, vmem_cap):
    # Default scoped VMEM is only 16/32 MiB; request headroom but stay under
    # the physical capacity of the part we are on.
    cap = 100 * 2**20 if vmem_cap >= 96 * 2**20 else 56 * 2**20
    return int(min(max(2 * est_bytes, 32 * 2**20), cap))


# ------------------------------ kernels ------------------------------------


def _gram_kernel(feat_ref, g_ref, *, inv_denom):
    """K-tiled Gram: accumulate F_tile @ F_tile^T directly into the resident
    f32 output block (constant block index across the k axis)."""
    ki = pl.program_id(0)

    @pl.when(ki == 0)
    def _():
        g_ref[...] = jnp.zeros_like(g_ref)

    f = feat_ref[...]
    g_ref[...] += lax.dot_general(
        f, f,
        dimension_numbers=(((1,), (1,)), ((), ())),
        preferred_element_type=jnp.float32)

    @pl.when(ki == pl.num_programs(0) - 1)
    def _():
        g_ref[...] = g_ref[...] * inv_denom


def _style_mse_kernel(fall_ref, tgt_ref, loss_ref, acc_ref, *,
                      inv_denom, inv_count, tm, nr):
    """Fused Gram + MSE. Grid = (row_blocks [parallel], k_tiles [arbitrary]).
    Single feature-stream input: the row block is sliced from the resident
    VMEM tile (no duplicated HBM reads / double-buffers)."""
    ki = pl.program_id(1)

    @pl.when(ki == 0)
    def _():
        acc_ref[...] = jnp.zeros_like(acc_ref)

    fall = fall_ref[...]
    if nr == 1:
        frow = fall
    else:
        start = pl.multiple_of(pl.program_id(0) * tm, tm)
        frow = fall_ref[pl.ds(start, tm), :]

    acc_ref[...] += lax.dot_general(
        frow, fall,
        dimension_numbers=(((1,), (1,)), ((), ())),
        preferred_element_type=jnp.float32)

    @pl.when(ki == pl.num_programs(1) - 1)
    def _():
        diff = acc_ref[...] * inv_denom - tgt_ref[...]
        # Per-row-block partial MSE into a lane-aligned (8,128) tile; the
        # wrapper sums all tiles (every other element is written as 0).
        loss_ref[...] = jnp.zeros_like(loss_ref)
        loss_ref[0, 0] = jnp.sum(diff * diff) * inv_count


# ------------------------------ wrappers ------------------------------------


def gram_matrix(x, *, compute_dtype=jnp.bfloat16):
    """Pallas equivalent of GramMatrix().forward(x) for NCHW input x."""
    a, b, c, d = x.shape
    m, k = a * b, c * d
    mp = _round_up(m, 128)          # lane-dense Gram / output stores
    cdt = jnp.dtype(compute_dtype) if compute_dtype is not None else jnp.dtype(x.dtype)
    esize = cdt.itemsize

    vmem_cap = _tpu_vmem_bytes()
    fixed = mp * mp * 4             # resident f32 Gram output block
    tk = _pick_k_tile(k, mp, esize, fixed, vmem_cap)
    kp = _round_up(k, tk)
    nk = kp // tk

    feats = _pad2d(x.reshape(m, k), mp, kp).astype(cdt)
    inv_denom = 1.0 / float(a * b * c * d)
    est = fixed + 2 * esize * tk * mp

    # TODO(synk): for very large m the (mp, mp) output block exceeds VMEM and
    # needs 2-D output tiling (symmetric j >= i blocks); threshold ~mp>=1792
    # on 64 MiB v7x, ~mp>=4096 on 128 MiB parts.
    g = pl.pallas_call(
        partial(_gram_kernel, inv_denom=inv_denom),
        out_shape=jax.ShapeDtypeStruct((mp, mp), jnp.float32),
        grid=(nk,),
        in_specs=[pl.BlockSpec((mp, tk), lambda ki: (0, ki))],
        out_specs=pl.BlockSpec((mp, mp), lambda ki: (0, 0)),
        compiler_params=pltpu.CompilerParams(
            dimension_semantics=("arbitrary",),
            vmem_limit_bytes=_vmem_limit(est, vmem_cap)),
        cost_estimate=pl.CostEstimate(
            flops=2 * mp * mp * kp,
            transcendentals=0,
            bytes_accessed=esize * mp * kp + 4 * mp * mp),
    )(feats)
    return g[:m, :m]


def style_mse_loss(x, target_gram, *, compute_dtype=jnp.bfloat16):
    """Pallas equivalent of StyleMSE.forward(x) given the precomputed target Gram."""
    a, b, c, d = x.shape
    m, k = a * b, c * d
    mp = _round_up(m, 128)
    num_cores = _num_tensorcores()
    tm = _pick_row_tile(mp, num_cores)
    nr = mp // tm
    cdt = jnp.dtype(compute_dtype) if compute_dtype is not None else jnp.dtype(x.dtype)
    esize = cdt.itemsize

    vmem_cap = _tpu_vmem_bytes()
    # Resident per row block: f32 accumulator + (double-buffered) f32 target rows.
    fixed = tm * mp * 4 + 2 * tm * mp * 4
    tk = _pick_k_tile(k, mp, esize, fixed, vmem_cap)
    kp = _round_up(k, tk)
    nk = kp // tk

    feats = _pad2d(x.reshape(m, k), mp, kp).astype(cdt)
    tgt = _pad2d(target_gram.astype(jnp.float32), mp, mp)

    inv_denom = 1.0 / float(a * b * c * d)
    inv_count = 1.0 / float(m * m)  # unpadded count: padded rows/cols are exact zeros
    est = fixed + 2 * esize * tk * mp

    partial_losses = pl.pallas_call(
        partial(_style_mse_kernel, inv_denom=inv_denom, inv_count=inv_count,
                tm=tm, nr=nr),
        out_shape=jax.ShapeDtypeStruct((nr * 8, 128), jnp.float32),
        grid=(nr, nk),
        in_specs=[
            pl.BlockSpec((mp, tk), lambda ri, ki: (0, ki)),   # full feature stream
            pl.BlockSpec((tm, mp), lambda ri, ki: (ri, 0)),   # matching target rows
        ],
        out_specs=pl.BlockSpec((8, 128), lambda ri, ki: (ri, 0)),
        scratch_shapes=[pltpu.VMEM((tm, mp), jnp.float32)],
        compiler_params=pltpu.CompilerParams(
            dimension_semantics=("parallel", "arbitrary"),
            vmem_limit_bytes=_vmem_limit(est, vmem_cap)),
        cost_estimate=pl.CostEstimate(
            flops=2 * mp * mp * kp + 3 * mp * mp,
            transcendentals=0,
            bytes_accessed=esize * nr * mp * kp + 4 * mp * mp + 4 * nr * 8 * 128),
    )(feats, tgt)
    return jnp.sum(partial_losses)


class StyleMSE:
    """Mirror of the PyTorch StyleMSE module (no learned parameters).

    Default compute_dtype is bf16 (fast MXU path, half the HBM bytes for the
    feature stream; f32 accumulation/epilogue).  Pass compute_dtype=jnp.float32
    for tight agreement with the f32 PyTorch reference.
    """

    def __init__(self, compute_dtype=jnp.bfloat16):
        self.target = None
        self.compute_dtype = compute_dtype

    def set_target(self, target):
        # target is an NCHW activation tensor; store its Gram matrix.
        # (.detach() / .to_device in the PyTorch module are framework no-ops.)
        self.target = gram_matrix(target, compute_dtype=self.compute_dtype)

    def __call__(self, x):
        assert self.target is not None, "call set_target first"
        return style_mse_loss(x, self.target, compute_dtype=self.compute_dtype)


# ------------------------------ reference -----------------------------------


def _gram_ref(x):
    a, b, c, d = x.shape
    f = x.reshape(a * b, c * d).astype(jnp.float32)
    return (f @ f.T) / (a * b * c * d)


def _style_mse_ref(x, target_x):
    g = _gram_ref(x)
    t = _gram_ref(target_x)
    return jnp.mean((g - t) ** 2)


# -------------------------------- main ---------------------------------------


if __name__ == "__main__":
    key = jax.random.PRNGKey(0)
    kx, kt = jax.random.split(key)

    # Small NCHW shapes consistent with the module: (batch=2, channels=4, 16, 16).
    x = jax.random.normal(kx, (2, 4, 16, 16), dtype=jnp.float32)
    target_act = jax.random.normal(kt, (2, 4, 16, 16), dtype=jnp.float32)

    ref = _style_mse_ref(x, target_act)

    # f32 path: tight agreement with the PyTorch/JAX f32 reference.
    mod_f32 = StyleMSE(compute_dtype=jnp.float32)
    mod_f32.set_target(target_act)
    loss_f32 = jax.block_until_ready(mod_f32(x))
    assert jnp.allclose(loss_f32, ref, rtol=1e-5, atol=1e-6), (loss_f32, ref)

    # Default bf16 feature-stream path (f32 accumulation): loose tolerance.
    mod = StyleMSE()
    mod.set_target(target_act)
    loss_bf16 = jax.block_until_ready(mod(x))
    assert jnp.allclose(loss_bf16, ref, rtol=5e-2, atol=1e-4), (loss_bf16, ref)

    print("KERNEL_OK")
</pallas_src>

<mosaic_0001>
module attributes {stable_mosaic.version = 11 : i64} {
  func.func @_gram_kernel(%arg0: i32, %arg1: memref<128x256xf32, #tpu.memory_space<vmem>>, %arg2: memref<128x128xf32, #tpu.memory_space<vmem>>) attributes {dimension_semantics = [#tpu.dimension_semantics<arbitrary>], iteration_bounds = array<i64: 1>, scalar_prefetch = 0 : i64, scratch_operands = 0 : i64, tpu.core_type = #tpu.core_type<tc>, window_params = [{transform_indices = @transform_0, window_bounds = array<i64: 128, 256>}, {pipeline_mode = #tpu.pipeline_mode<synchronous>, transform_indices = @transform_1, window_bounds = array<i64: 128, 128>}]} {
    %c0_i32 = arith.constant 0 : i32
    %0 = arith.cmpi eq, %arg0, %c0_i32 : i32
    %1 = arith.extui %0 : i1 to i32
    %c0_i32_0 = arith.constant 0 : i32
    %2 = arith.cmpi ne, %1, %c0_i32_0 : i32
    scf.if %2 {
      %cst_8 = arith.constant 0.000000e+00 : f32
      %11 = vector.broadcast %cst_8 : f32 to vector<128x128xf32>
      %c0_9 = arith.constant 0 : index
      %c0_10 = arith.constant 0 : index
      %12 = vector.load %arg2[%c0_9, %c0_10] : memref<128x128xf32, #tpu.memory_space<vmem>>, vector<128x128xf32>
      tpu.vector_store %arg2[%c0_9, %c0_10], %11 {strides = array<i32>} : memref<128x128xf32, #tpu.memory_space<vmem>>, vector<128x128xf32>,
    } else {
    }
    %c0 = arith.constant 0 : index
    %c0_1 = arith.constant 0 : index
    %3 = vector.load %arg1[%c0, %c0_1] : memref<128x256xf32, #tpu.memory_space<vmem>>, vector<128x256xf32>
    %c0_2 = arith.constant 0 : index
    %c0_3 = arith.constant 0 : index
    %4 = vector.load %arg2[%c0_2, %c0_3] : memref<128x128xf32, #tpu.memory_space<vmem>>, vector<128x128xf32>
    %cst = arith.constant dense<0.000000e+00> : vector<128x128xf32>
    %5 = tpu.matmul %3, %3, %cst {dimension_numbers = #tpu.dot_dimension_numbers<[1], [1], [0], [0], [0, 0, 1, 0], [], []>} : vector<128x256xf32>, vector<128x256xf32>, vector<128x128xf32> -> vector<128x128xf32>
    %6 = arith.addf %4, %5 : vector<128x128xf32>
    %c0_4 = arith.constant 0 : index
    %c0_5 = arith.constant 0 : index
    %7 = vector.load %arg2[%c0_4, %c0_5] : memref<128x128xf32, #tpu.memory_space<vmem>>, vector<128x128xf32>
    tpu.vector_store %arg2[%c0_4, %c0_5], %6 {strides = array<i32>} : memref<128x128xf32, #tpu.memory_space<vmem>>, vector<128x128xf32>,
    %c0_i32_6 = arith.constant 0 : i32
    %8 = arith.cmpi eq, %arg0, %c0_i32_6 : i32
    %9 = arith.extui %8 : i1 to i32
    %c0_i32_7 = arith.constant 0 : i32
    %10 = arith.cmpi ne, %9, %c0_i32_7 : i32
    scf.if %10 {
      %c0_8 = arith.constant 0 : index
      %c0_9 = arith.constant 0 : index
      %11 = vector.load %arg2[%c0_8, %c0_9] : memref<128x128xf32, #tpu.memory_space<vmem>>, vector<128x128xf32>
      %cst_10 = arith.constant 4.8828125E-4 : f32
      %12 = vector.broadcast %cst_10 : f32 to vector<128x128xf32>
      %13 = arith.mulf %11, %12 : vector<128x128xf32>
      %c0_11 = arith.constant 0 : index
      %c0_12 = arith.constant 0 : index
      %14 = vector.load %arg2[%c0_11, %c0_12] : memref<128x128xf32, #tpu.memory_space<vmem>>, vector<128x128xf32>
      tpu.vector_store %arg2[%c0_11, %c0_12], %13 {strides = array<i32>} : memref<128x128xf32, #tpu.memory_space<vmem>>, vector<128x128xf32>,
    } else {
    }
    return
  }
  func.func @transform_0(%arg0: i32) -> (i32, i32) {
    %c0_i32 = arith.constant 0 : i32
    %c0_i32_0 = arith.constant 0 : i32
    return %c0_i32, %arg0 : i32, i32
  }
  func.func @transform_1(%arg0: i32) -> (i32, i32) {
    %c0_i32 = arith.constant 0 : i32
    %c0_i32_0 = arith.constant 0 : i32
    %c0_i32_1 = arith.constant 0 : i32
    return %c0_i32, %c0_i32_0 : i32, i32
  }
}

</mosaic_0001>

<bundles_post_ra>
// kernel: tpu_custom_call.1
= control target key start
LH: loop header
LB: loop body
LE: loop exit
PB: predicated region body
PF: predicated region fallthrough
CT: control target
= control target key end

     0   :  { %6 = vsyncpa [#allocation3], 0  ;;  %s528_s0 = inlined_call_operand.hbm [shape: f32[128,256], index: 0, kind: input, shape index: {}]   ;;  %s529_s1 = inlined_call_operand.hbm [shape: f32[128,128], index: 1, kind: output, shape index: {}]  }
   0x1   :  { %7 = vsyncpa [#allocation4], 0  ;;  %s12_s8 = sshll.u32 %s528_s0, 4  ;;  %s416_s9 = smov [#allocation2]   ;;  %s13_s8 = int_to_ptr.hbm [resolvable:$true] %s12_s8 }
   0x2   :  { %s14_s10 = sshll.u32 %s416_s9, 4  ;;  %s417_s11 = smov 256   ;;  %s15_s10 = int_to_ptr.vmem [resolvable:$true] %s14_s10 }
   0x3   :  { %s418_s12 = smov 16  }
   0x4   :  { %20 = dma.hbm_to_vmem [thread:$0]  %s13_s8, 4096, %s15_s10, [#allocation3], %s417_s11, %s417_s11, %s418_s12  }
   0x5   :  { %412 = dma.done.wait [#allocation3], 4096  }
   0x6   :  { %413 = vsyncadd [#allocation3], 4294963200  ;;  %v435_v0 = vld [vmem:[#allocation2 + $0xf0] sm:$0xff]  ;;  %v437_v1 = vld [vmem:[#allocation2 + $0xf8] sm:$0xff]  ;;  %s419_s0 = smov [#allocation5]   ;;  %s312_s16 = sshll.u32 %s529_s1, 4  ;;  %s313_s16 = int_to_ptr.hbm [resolvable:$true] %s312_s16 }
   0x7   :  { %325 = vmatpush.xpose.msra.mxu2 %v435_v0  ;;  %341 = vmatpush.xpose.msra.mxu3 %v437_v1  ;;  %v441_v2 = vld [vmem:[#allocation2 + $0xe0] sm:$0xff]  ;;  %v443_v3 = vld [vmem:[#allocation2 + $0xe8] sm:$0xff]  ;;  %v449_v4 = vld [vmem:[#allocation2 + $0xd0] sm:$0xff]  ;;  %s310_s13 = sshll.u32 %s419_s0, 4  ;;  %s420_s17 = smov 128   ;;  %s311_s13 = int_to_ptr.vmem [resolvable:$true] %s310_s13 }
   0x8   :  { %93 = vmatpush.xpose.msra.mxu0 %v435_v0  ;;  %158 = vmatpush.xpose.msra.mxu1 %v437_v1  ;;  %v451_v5 = vld [vmem:[#allocation2 + $0xd8] sm:$0xff]  ;;  %v457_v6 = vld [vmem:[#allocation2 + $0xc0] sm:$0xff]  ;;  %v459_v7 = vld [vmem:[#allocation2 + $0xc8] sm:$0xff]  ;;  %s421_s18 = smov 8  }
   0x9   :  { %v465_v8 = vld [vmem:[#allocation2 + $0xb0] sm:$0xff]  ;;  %v467_v9 = vld [vmem:[#allocation2 + $0xb8] sm:$0xff]  ;;  %v473_v10 = vld [vmem:[#allocation2 + $0xa0] sm:$0xff] }
   0xa   :  { %v475_v11 = vld [vmem:[#allocation2 + $0xa8] sm:$0xff]  ;;  %v481_v12 = vld [vmem:[#allocation2 + $0x90] sm:$0xff]  ;;  %v483_v13 = vld [vmem:[#allocation2 + $0x98] sm:$0xff] }
   0xb   :  { %326 = vmatpush.xpose.msra.mxu2 %v441_v2  ;;  %342 = vmatpush.xpose.msra.mxu3 %v443_v3  ;;  %v61_v14 = vld [vmem:[#allocation2 + $0x80] sm:$0xff]  ;;  %v62_v15 = vld [vmem:[#allocation2 + $0x88] sm:$0xff]  ;;  %v491_v16 = vld [vmem:[#allocation2 + $0x70] sm:$0xff] }
   0xc   :  { %94 = vmatpush.xpose.msra.mxu0 %v441_v2  ;;  %159 = vmatpush.xpose.msra.mxu1 %v443_v3  ;;  %v493_v17 = vld [vmem:[#allocation2 + $0x78] sm:$0xff]  ;;  %v497_v18 = vld [vmem:[#allocation2 + $0x60] sm:$0xff]  ;;  %v499_v19 = vld [vmem:[#allocation2 + $0x68] sm:$0xff] }
   0xd   :  { %v55_v20 = vld [vmem:[#allocation2 + $0x50] sm:$0xff]  ;;  %v56_v21 = vld [vmem:[#allocation2 + $0x58] sm:$0xff]  ;;  %v53_v22 = vld [vmem:[#allocation2 + $0x40] sm:$0xff] }
   0xe   :  { %v54_v23 = vld [vmem:[#allocation2 + $0x48] sm:$0xff]  ;;  %v51_v24 = vld [vmem:[#allocation2 + $0x30] sm:$0xff]  ;;  %v52_v25 = vld [vmem:[#allocation2 + $0x38] sm:$0xff] }
   0xf   :  { %327 = vmatpush.xpose.msra.mxu2 %v449_v4  ;;  %343 = vmatpush.xpose.msra.mxu3 %v451_v5  ;;  %v49_v26 = vld [vmem:[#allocation2 + $0x20] sm:$0xff]  ;;  %v50_v27 = vld [vmem:[#allocation2 + $0x28] sm:$0xff]  ;;  %v47_v28 = vld [vmem:[#allocation2 + $0x10] sm:$0xff] }
  0x10   :  { %95 = vmatpush.xpose.msra.mxu0 %v449_v4  ;;  %160 = vmatpush.xpose.msra.mxu1 %v451_v5  ;;  %v48_v29 = vld [vmem:[#allocation2 + $0x18] sm:$0xff]  ;;  %v45_v30 = vld [vmem:[#allocation2] sm:$0xff]  ;;  %v46_v31 = vld [vmem:[#allocation2 + $0x8] sm:$0xff] }
  0x13   :  { %328 = vmatpush.xpose.msra.mxu2 %v457_v6  ;;  %344 = vmatpush.xpose.msra.mxu3 %v459_v7 }
  0x14   :  { %96 = vmatpush.xpose.msra.mxu0 %v457_v6  ;;  %161 = vmatpush.xpose.msra.mxu1 %v459_v7 }
  0x17   :  { %329 = vmatpush.xpose.msra.mxu2 %v465_v8  ;;  %345 = vmatpush.xpose.msra.mxu3 %v467_v9 }
  0x18   :  { %97 = vmatpush.xpose.msra.mxu0 %v465_v8  ;;  %162 = vmatpush.xpose.msra.mxu1 %v467_v9 }
  0x1b   :  { %330 = vmatpush.xpose.msra.mxu2 %v473_v10  ;;  %346 = vmatpush.xpose.msra.mxu3 %v475_v11 }
  0x1c   :  { %98 = vmatpush.xpose.msra.mxu0 %v473_v10  ;;  %163 = vmatpush.xpose.msra.mxu1 %v475_v11 }
  0x1f   :  { %331 = vmatpush.xpose.msra.mxu2 %v481_v12  ;;  %347 = vmatpush.xpose.msra.mxu3 %v483_v13 }
  0x20   :  { %99 = vmatpush.xpose.msra.mxu0 %v481_v12  ;;  %164 = vmatpush.xpose.msra.mxu1 %v483_v13 }
  0x23   :  { %332 = vmatpush.xpose.msra.mxu2 %v61_v14  ;;  %348 = vmatpush.xpose.msra.mxu3 %v62_v15 }
  0x24   :  { %100 = vmatpush.xpose.msra.mxu0 %v61_v14  ;;  %165 = vmatpush.xpose.msra.mxu1 %v62_v15 }
  0x27   :  { %333 = vmatpush.xpose.msra.mxu2 %v491_v16  ;;  %349 = vmatpush.xpose.msra.mxu3 %v493_v17 }
  0x28   :  { %101 = vmatpush.xpose.msra.mxu0 %v491_v16  ;;  %166 = vmatpush.xpose.msra.mxu1 %v493_v17 }
  0x2b   :  { %334 = vmatpush.xpose.msra.mxu2 %v497_v18  ;;  %350 = vmatpush.xpose.msra.mxu3 %v499_v19 }
  0x2c   :  { %102 = vmatpush.xpose.msra.mxu0 %v497_v18  ;;  %167 = vmatpush.xpose.msra.mxu1 %v499_v19 }
  0x2f   :  { %335 = vmatpush.xpose.msra.mxu2 %v55_v20  ;;  %351 = vmatpush.xpose.msra.mxu3 %v56_v21 }
  0x30   :  { %103 = vmatpush.xpose.msra.mxu0 %v55_v20  ;;  %168 = vmatpush.xpose.msra.mxu1 %v56_v21 }
  0x33   :  { %336 = vmatpush.xpose.msra.mxu2 %v53_v22  ;;  %352 = vmatpush.xpose.msra.mxu3 %v54_v23 }
  0x34   :  { %104 = vmatpush.xpose.msra.mxu0 %v53_v22  ;;  %169 = vmatpush.xpose.msra.mxu1 %v54_v23 }
  0x37   :  { %337 = vmatpush.xpose.msra.mxu2 %v51_v24  ;;  %353 = vmatpush.xpose.msra.mxu3 %v52_v25 }
  0x38   :  { %105 = vmatpush.xpose.msra.mxu0 %v51_v24  ;;  %170 = vmatpush.xpose.msra.mxu1 %v52_v25 }
  0x3b   :  { %338 = vmatpush.xpose.msra.mxu2 %v49_v26  ;;  %354 = vmatpush.xpose.msra.mxu3 %v50_v27 }
  0x3c   :  { %106 = vmatpush.xpose.msra.mxu0 %v49_v26  ;;  %171 = vmatpush.xpose.msra.mxu1 %v50_v27 }
  0x3f   :  { %339 = vmatpush.xpose.msra.mxu2 %v47_v28  ;;  %355 = vmatpush.xpose.msra.mxu3 %v48_v29 }
  0x40   :  { %107 = vmatpush.xpose.msra.mxu0 %v47_v28  ;;  %172 = vmatpush.xpose.msra.mxu1 %v48_v29 }
  0x43   :  { %340 = vmatpush.xpose.msra.mxu2 %v45_v30  ;;  %356 = vmatpush.xpose.msra.mxu3 %v46_v31 }
  0x44   :  { %108 = vmatpush.xpose.msra.mxu0 %v45_v30  ;;  %173 = vmatpush.xpose.msra.mxu1 %v46_v31 }
  0x46   :  { %133 = vmatmul.f32.vlgmr.msra.gmra.mxu2 %v61_v14  ;;  %198 = vmatmul.f32.vlgmr.msra.gmra.mxu3 %v62_v15 }
  0x47   :  { %109 = vmatmul.f32.vlgmr.msra.gmra.mxu0 %v45_v30  ;;  %174 = vmatmul.f32.vlgmr.msra.gmra.mxu1 %v46_v31 }
  0x4e   :  { %136 = vmatmul.f32.gmra.mxu2 %v481_v12  ;;  %201 = vmatmul.f32.gmra.mxu3 %v483_v13 }
  0x4f   :  { %112 = vmatmul.f32.gmra.mxu0 %v47_v28  ;;  %177 = vmatmul.f32.gmra.mxu1 %v48_v29 }
  0x56   :  { %139 = vmatmul.f32.gmra.mxu2 %v473_v10  ;;  %204 = vmatmul.f32.gmra.mxu3 %v475_v11 }
  0x57   :  { %115 = vmatmul.f32.gmra.mxu0 %v49_v26  ;;  %180 = vmatmul.f32.gmra.mxu1 %v50_v27 }
  0x5e   :  { %142 = vmatmul.f32.gmra.mxu2 %v465_v8  ;;  %207 = vmatmul.f32.gmra.mxu3 %v467_v9 }
  0x5f   :  { %118 = vmatmul.f32.gmra.mxu0 %v51_v24  ;;  %183 = vmatmul.f32.gmra.mxu1 %v52_v25 }
  0x66   :  { %145 = vmatmul.f32.gmra.mxu2 %v457_v6  ;;  %210 = vmatmul.f32.gmra.mxu3 %v459_v7 }
  0x67   :  { %121 = vmatmul.f32.gmra.mxu0 %v53_v22  ;;  %186 = vmatmul.f32.gmra.mxu1 %v54_v23 }
  0x6e   :  { %148 = vmatmul.f32.gmra.mxu2 %v449_v4  ;;  %213 = vmatmul.f32.gmra.mxu3 %v451_v5 }
  0x6f   :  { %124 = vmatmul.f32.gmra.mxu0 %v55_v20  ;;  %189 = vmatmul.f32.gmra.mxu1 %v56_v21 }
  0x76   :  { %151 = vmatmul.f32.gmra.mxu2 %v441_v2  ;;  %216 = vmatmul.f32.gmra.mxu3 %v443_v3 }
  0x77   :  { %127 = vmatmul.f32.gmra.mxu0 %v497_v18  ;;  %192 = vmatmul.f32.gmra.mxu1 %v499_v19 }
  0x7e   :  { %154 = vmatmul.f32.gmra.mxu2 %v435_v0  ;;  %219 = vmatmul.f32.gmra.mxu3 %v437_v1 }
  0x7f   :  { %130 = vmatmul.f32.gmra.mxu0 %v491_v16  ;;  %195 = vmatmul.f32.gmra.mxu1 %v493_v17 }
  0xc4   :  { %v110_v32 = vpop.f32.mrf.mxu0  ;;  %v175_v33 = vpop.f32.mrf.mxu1 }
  0xc5   :  { %v176_v34 = vadd.f32 %v175_v33, %v110_v32 }
  0xc7   :  { %v274_v36 = vmul.f32 0.00048828125, %v176_v34 }
  0xc9   :  { %v134_v35 = vpop.f32.mrf.mxu2  ;;  %v199_v37 = vpop.f32.mrf.mxu3  ;;  %290 = vst [vmem:[#allocation5] sm:$0xff] %v274_v36 }
  0xca   :  { %v200_v38 = vadd.f32 %v199_v37, %v134_v35 }
  0xcc   :  { %v113_v39 = vpop.f32.mrf.mxu0  ;;  %v178_v40 = vpop.f32.mrf.mxu1  ;;  %v282_v42 = vmul.f32 0.00048828125, %v200_v38 }
  0xcd   :  { %v179_v41 = vadd.f32 %v178_v40, %v113_v39 }
  0xce   :  { %298 = vst [vmem:[#allocation5 + $0x40] sm:$0xff] %v282_v42 }
  0xcf   :  { %v275_v44 = vmul.f32 0.00048828125, %v179_v41 }
  0xd1   :  { %v137_v43 = vpop.f32.mrf.mxu2  ;;  %v202_v45 = vpop.f32.mrf.mxu3  ;;  %291 = vst [vmem:[#allocation5 + $0x8] sm:$0xff] %v275_v44 }
  0xd2   :  { %v203_v46 = vadd.f32 %v202_v45, %v137_v43 }
  0xd4   :  { %v116_v47 = vpop.f32.mrf.mxu0  ;;  %v181_v48 = vpop.f32.mrf.mxu1  ;;  %v283_v50 = vmul.f32 0.00048828125, %v203_v46 }
  0xd5   :  { %v182_v49 = vadd.f32 %v181_v48, %v116_v47 }
  0xd6   :  { %299 = vst [vmem:[#allocation5 + $0x48] sm:$0xff] %v283_v50 }
  0xd7   :  { %v276_v52 = vmul.f32 0.00048828125, %v182_v49 }
  0xd9   :  { %v140_v51 = vpop.f32.mrf.mxu2  ;;  %v205_v53 = vpop.f32.mrf.mxu3  ;;  %292 = vst [vmem:[#allocation5 + $0x10] sm:$0xff] %v276_v52 }
  0xda   :  { %v206_v54 = vadd.f32 %v205_v53, %v140_v51 }
  0xdc   :  { %v119_v55 = vpop.f32.mrf.mxu0  ;;  %v184_v56 = vpop.f32.mrf.mxu1  ;;  %v284_v58 = vmul.f32 0.00048828125, %v206_v54 }
  0xdd   :  { %v185_v57 = vadd.f32 %v184_v56, %v119_v55 }
  0xde   :  { %300 = vst [vmem:[#allocation5 + $0x50] sm:$0xff] %v284_v58 }
  0xdf   :  { %v277_v60 = vmul.f32 0.00048828125, %v185_v57 }
  0xe1   :  { %v143_v59 = vpop.f32.mrf.mxu2  ;;  %v208_v61 = vpop.f32.mrf.mxu3  ;;  %293 = vst [vmem:[#allocation5 + $0x18] sm:$0xff] %v277_v60 }
  0xe2   :  { %v209_v62 = vadd.f32 %v208_v61, %v143_v59 }
  0xe4   :  { %v122_v63 = vpop.f32.mrf.mxu0  ;;  %v187_v0 = vpop.f32.mrf.mxu1  ;;  %v285_v2 = vmul.f32 0.00048828125, %v209_v62 }
  0xe5   :  { %v188_v1 = vadd.f32 %v187_v0, %v122_v63 }
  0xe6   :  { %301 = vst [vmem:[#allocation5 + $0x58] sm:$0xff] %v285_v2 }
  0xe7   :  { %v278_v4 = vmul.f32 0.00048828125, %v188_v1 }
  0xe9   :  { %v146_v3 = vpop.f32.mrf.mxu2  ;;  %v211_v5 = vpop.f32.mrf.mxu3  ;;  %294 = vst [vmem:[#allocation5 + $0x20] sm:$0xff] %v278_v4 }
  0xea   :  { %v212_v6 = vadd.f32 %v211_v5, %v146_v3 }
  0xec   :  { %v125_v7 = vpop.f32.mrf.mxu0  ;;  %v190_v8 = vpop.f32.mrf.mxu1  ;;  %v286_v10 = vmul.f32 0.00048828125, %v212_v6 }
  0xed   :  { %v191_v9 = vadd.f32 %v190_v8, %v125_v7 }
  0xee   :  { %302 = vst [vmem:[#allocation5 + $0x60] sm:$0xff] %v286_v10 }
  0xef   :  { %v279_v12 = vmul.f32 0.00048828125, %v191_v9 }
  0xf1   :  { %v149_v11 = vpop.f32.mrf.mxu2  ;;  %v214_v13 = vpop.f32.mrf.mxu3  ;;  %295 = vst [vmem:[#allocation5 + $0x28] sm:$0xff] %v279_v12 }
  0xf2   :  { %v215_v14 = vadd.f32 %v214_v13, %v149_v11 }
  0xf4   :  { %v128_v15 = vpop.f32.mrf.mxu0  ;;  %v193_v16 = vpop.f32.mrf.mxu1  ;;  %v287_v18 = vmul.f32 0.00048828125, %v215_v14 }
  0xf5   :  { %v194_v17 = vadd.f32 %v193_v16, %v128_v15 }
  0xf6   :  { %303 = vst [vmem:[#allocation5 + $0x68] sm:$0xff] %v287_v18 }
  0xf7   :  { %v280_v20 = vmul.f32 0.00048828125, %v194_v17 }
  0xf9   :  { %v152_v19 = vpop.f32.mrf.mxu2  ;;  %v217_v21 = vpop.f32.mrf.mxu3  ;;  %296 = vst [vmem:[#allocation5 + $0x30] sm:$0xff] %v280_v20 }
  0xfa   :  { %v218_v22 = vadd.f32 %v217_v21, %v152_v19 }
  0xfc   :  { %v131_v23 = vpop.f32.mrf.mxu0  ;;  %v196_v24 = vpop.f32.mrf.mxu1  ;;  %v288_v26 = vmul.f32 0.00048828125, %v218_v22 }
  0xfd   :  { %v197_v25 = vadd.f32 %v196_v24, %v131_v23 }
  0xfe   :  { %304 = vst [vmem:[#allocation5 + $0x70] sm:$0xff] %v288_v26 }
  0xff   :  { %v281_v28 = vmul.f32 0.00048828125, %v197_v25 }
 0x101   :  { %v155_v27 = vpop.f32.mrf.mxu2  ;;  %v220_v29 = vpop.f32.mrf.mxu3  ;;  %297 = vst [vmem:[#allocation5 + $0x38] sm:$0xff] %v281_v28 }
 0x102   :  { %v221_v30 = vadd.f32 %v220_v29, %v155_v27 }
 0x104   :  { %v289_v31 = vmul.f32 0.00048828125, %v221_v30 }
 0x106   :  { %305 = vst [vmem:[#allocation5 + $0x78] sm:$0xff] %v289_v31 }
 0x107   :  { %318 = dma.vmem_to_hbm [thread:$0]  %s311_s13, 2048, %s313_s16, [#allocation4], %s420_s17, %s420_s17, %s421_s18  }
 0x108   :  { %414 = dma.done.wait [#allocation4], 2048  }
 0x109   :  { %415 = vsyncadd [#allocation4], 4294965248 }
 0x10a   :  { %323 = vsyncpa [#allocation3], 1 }
 0x10b   :  { %324 = vsyncpa [#allocation4], 1 }

</bundles_post_ra>
